<compile_context>
chip_gen: v6e
topology: v6e:2x2x1
jax: 0.10.0
libtpu: 0.0.40
codegen_flags: <defaults>
</compile_context>

<pallas_src>
import functools

import jax
import jax.numpy as jnp
from jax.experimental import pallas as pl
from jax.experimental.pallas import tpu as pltpu


def _round_up(x: int, m: int) -> int:
    return ((x + m - 1) // m) * m


def value_mlp_kernel(s_ref, g_ref,
                     w1s_ref, w1g_ref, b1_ref,
                     w2_ref, b2_ref,
                     w3_ref, b3_ref,
                     w4_ref, b4_ref,
                     out_ref):
    """One batch tile of the 4-layer value MLP.

    s_ref: (btile, S)   g_ref: (btile, G)
    w1s_ref: (S, H)  w1g_ref: (G, H)  b1/b2/b3_ref: (1, H)
    w2/w3_ref: (H, H)  w4_ref: (1, H)  b4_ref: (1,) scalar in SMEM
    out_ref: (1, btile) -- batch laid out on the lane axis (lane-dense store).
    """
    # Layer 1: fused concat via split-K matmul.
    h = (jnp.dot(s_ref[...], w1s_ref[...], preferred_element_type=jnp.float32)
         + jnp.dot(g_ref[...], w1g_ref[...], preferred_element_type=jnp.float32)
         + b1_ref[...])
    h = jnp.maximum(h, 0.0)

    h = jnp.dot(h, w2_ref[...], preferred_element_type=jnp.float32) + b2_ref[...]
    h = jnp.maximum(h, 0.0)

    h = jnp.dot(h, w3_ref[...], preferred_element_type=jnp.float32) + b3_ref[...]
    h = jnp.maximum(h, 0.0)

    # Final Linear(H, 1): VPU multiply + cross-lane reduce (XLU slot), not an
    # N=1 MXU matmul. Result is a lane-major (btile,) vector.
    v = jnp.sum(h * w4_ref[...], axis=-1) + b4_ref[0]
    out_ref[0, :] = v.astype(out_ref.dtype)


def init_linear(key, fan_in, fan_out):
    """torch.nn.Linear default init: U[-1/sqrt(fan_in), 1/sqrt(fan_in)]."""
    kw, kb = jax.random.split(key)
    bound = 1.0 / jnp.sqrt(jnp.float32(fan_in))
    # Stored as (fan_in, fan_out) so the kernel computes x @ W (== x @ W_torch.T).
    w = jax.random.uniform(kw, (fan_in, fan_out), jnp.float32, -bound, bound)
    b = jax.random.uniform(kb, (fan_out,), jnp.float32, -bound, bound)
    return w, b


def make_value_params(key, input_size, hidden_size):
    k1, k2, k3, k4 = jax.random.split(key, 4)
    w1, b1 = init_linear(k1, input_size, hidden_size)
    w2, b2 = init_linear(k2, hidden_size, hidden_size)
    w3, b3 = init_linear(k3, hidden_size, hidden_size)
    w4, b4 = init_linear(k4, hidden_size, 1)
    return (w1, b1, w2, b2, w3, b3, w4, b4)


@functools.partial(jax.jit, static_argnames=("btile",))
def value_forward(s, g, params, *, btile=128):
    """Equivalent of Value.forward(s, g) with use_antigoal=False.

    btile = batch rows per grid step. For large batches use 512-2048 and size
    against 64 MiB VMEM on v7x (vs 128 MiB on v5e/v6e); weights are tiny and
    stay resident, so the activation tiles are the only scaling term.
    """
    w1, b1, w2, b2, w3, b3, w4, b4 = params
    B, S = s.shape
    G = g.shape[1]
    H = w2.shape[0]

    s = s.astype(jnp.float32)
    g = g.astype(jnp.float32)

    # Batch tiling: btile is a multiple of 128; batch padded to a multiple of it.
    btile = max(128, _round_up(min(int(btile), B), 128))
    b_pad = _round_up(B, btile)
    if b_pad != B:
        s = jnp.pad(s, ((0, b_pad - B), (0, 0)))
        g = jnp.pad(g, ((0, b_pad - B), (0, 0)))
    n_tiles = b_pad // btile

    # Split W1 into row-blocks so the concat happens inside the kernel.
    w1s = w1[:S]
    w1g = w1[S:]
    b1r = b1.reshape(1, H)
    b2r = b2.reshape(1, H)
    b3r = b3.reshape(1, H)
    w4r = w4.reshape(1, H)
    b4r = b4.reshape(1).astype(jnp.float32)

    const = lambda i: (0, 0)   # weights/biases: same block every step (VMEM-resident)
    in_specs = [
        pl.BlockSpec((btile, S), lambda i: (i, 0)),
        pl.BlockSpec((btile, G), lambda i: (i, 0)),
        pl.BlockSpec((S, H), const),
        pl.BlockSpec((G, H), const),
        pl.BlockSpec((1, H), const),
        pl.BlockSpec((H, H), const),
        pl.BlockSpec((1, H), const),
        pl.BlockSpec((H, H), const),
        pl.BlockSpec((1, H), const),
        pl.BlockSpec((1, H), const),
        pl.BlockSpec(memory_space=pltpu.MemorySpace.SMEM),   # scalar bias b4
    ]
    out_spec = pl.BlockSpec((1, btile), lambda i: (0, i))

    flops = 2 * b_pad * ((S + G) * H + 2 * H * H + H)
    bytes_accessed = 4 * (b_pad * (S + G + 1) + (S + G) * H + 2 * H * H + 4 * H + 1)
    cost = pl.CostEstimate(flops=flops, transcendentals=0,
                           bytes_accessed=bytes_accessed)

    out = pl.pallas_call(
        value_mlp_kernel,
        out_shape=jax.ShapeDtypeStruct((1, b_pad), jnp.float32),
        grid=(n_tiles,),
        in_specs=in_specs,
        out_specs=out_spec,
        compiler_params=pltpu.CompilerParams(
            dimension_semantics=("parallel",),
        ),
        cost_estimate=cost,
    )(s, g, w1s, w1g, b1r, w2, b2r, w3, b3r, w4r, b4r)

    # .view(-1) in the PyTorch module; drop batch padding.
    return out[0, :B]


if __name__ == "__main__":
    # env.state_size=12, env.goal_size=4, hidden_size=32, num_layers=4.
    # B=200 exercises both multi-step grid (btile=128 -> 2 tiles) and padding.
    B = 200
    STATE_SIZE = 12
    GOAL_SIZE = 4
    HIDDEN = 32
    INPUT_SIZE = STATE_SIZE + GOAL_SIZE

    key = jax.random.PRNGKey(0)
    k_params, k_s, k_g = jax.random.split(key, 3)

    params = make_value_params(k_params, INPUT_SIZE, HIDDEN)
    s = jax.random.normal(k_s, (B, STATE_SIZE), jnp.float32)
    g = jax.random.normal(k_g, (B, GOAL_SIZE), jnp.float32)

    v = value_forward(s, g, params)
    v = jax.block_until_ready(v)

    # Pure-JAX reference of the same math (unsplit weights, explicit concat).
    def ref(s, g, params):
        w1, b1, w2, b2, w3, b3, w4, b4 = params
        x = jnp.concatenate([s, g], axis=1)
        h = jnp.maximum(x @ w1 + b1, 0.0)
        h = jnp.maximum(h @ w2 + b2, 0.0)
        h = jnp.maximum(h @ w3 + b3, 0.0)
        return (h @ w4 + b4).reshape(-1)

    v_ref = ref(s, g, params)
    assert v.shape == (B,)
    assert jnp.allclose(v, v_ref, atol=1e-4, rtol=1e-4), float(
        jnp.max(jnp.abs(v - v_ref)))

    print("KERNEL_OK")
</pallas_src>

<mosaic_0001>
module attributes {stable_mosaic.version = 11 : i64} {
  func.func @value_mlp_kernel(%arg0: i32, %arg1: memref<128x12xf32, #tpu.memory_space<vmem>>, %arg2: memref<128x4xf32, #tpu.memory_space<vmem>>, %arg3: memref<12x32xf32, #tpu.memory_space<vmem>>, %arg4: memref<4x32xf32, #tpu.memory_space<vmem>>, %arg5: memref<1x32xf32, #tpu.memory_space<vmem>>, %arg6: memref<32x32xf32, #tpu.memory_space<vmem>>, %arg7: memref<1x32xf32, #tpu.memory_space<vmem>>, %arg8: memref<32x32xf32, #tpu.memory_space<vmem>>, %arg9: memref<1x32xf32, #tpu.memory_space<vmem>>, %arg10: memref<1x32xf32, #tpu.memory_space<vmem>>, %arg11: memref<1xf32, #tpu.memory_space<smem>>, %arg12: memref<1x128xf32, #tpu.memory_space<vmem>>) attributes {dimension_semantics = [#tpu.dimension_semantics<parallel>], iteration_bounds = array<i64: 2>, scalar_prefetch = 0 : i64, scratch_operands = 0 : i64, tpu.core_type = #tpu.core_type<tc>, window_params = [{transform_indices = @transform_0, window_bounds = array<i64: 128, 12>}, {transform_indices = @transform_1, window_bounds = array<i64: 128, 4>}, {pipeline_mode = #tpu.pipeline_mode<synchronous>, transform_indices = @transform_2, window_bounds = array<i64: 12, 32>}, {pipeline_mode = #tpu.pipeline_mode<synchronous>, transform_indices = @transform_3, window_bounds = array<i64: 4, 32>}, {pipeline_mode = #tpu.pipeline_mode<synchronous>, transform_indices = @transform_4, window_bounds = array<i64: 1, 32>}, {pipeline_mode = #tpu.pipeline_mode<synchronous>, transform_indices = @transform_5, window_bounds = array<i64: 32, 32>}, {pipeline_mode = #tpu.pipeline_mode<synchronous>, transform_indices = @transform_6, window_bounds = array<i64: 1, 32>}, {pipeline_mode = #tpu.pipeline_mode<synchronous>, transform_indices = @transform_7, window_bounds = array<i64: 32, 32>}, {pipeline_mode = #tpu.pipeline_mode<synchronous>, transform_indices = @transform_8, window_bounds = array<i64: 1, 32>}, {pipeline_mode = #tpu.pipeline_mode<synchronous>, transform_indices = @transform_9, window_bounds = array<i64: 1, 32>}, {transform_indices = @transform_10, window_bounds = array<i64: 1>}, {transform_indices = @transform_11, window_bounds = array<i64: 1, 128>}]} {
    %c0 = arith.constant 0 : index
    %c0_0 = arith.constant 0 : index
    %0 = vector.load %arg1[%c0, %c0_0] : memref<128x12xf32, #tpu.memory_space<vmem>>, vector<128x12xf32>
    %c0_1 = arith.constant 0 : index
    %c0_2 = arith.constant 0 : index
    %1 = vector.load %arg3[%c0_1, %c0_2] : memref<12x32xf32, #tpu.memory_space<vmem>>, vector<12x32xf32>
    %cst = arith.constant dense<0.000000e+00> : vector<128x32xf32>
    %2 = tpu.matmul %0, %1, %cst {dimension_numbers = #tpu.dot_dimension_numbers<[1], [0], [0], [1], [0, 0, 1, 1], [], []>} : vector<128x12xf32>, vector<12x32xf32>, vector<128x32xf32> -> vector<128x32xf32>
    %c0_3 = arith.constant 0 : index
    %c0_4 = arith.constant 0 : index
    %3 = vector.load %arg2[%c0_3, %c0_4] : memref<128x4xf32, #tpu.memory_space<vmem>>, vector<128x4xf32>
    %c0_5 = arith.constant 0 : index
    %c0_6 = arith.constant 0 : index
    %4 = vector.load %arg4[%c0_5, %c0_6] : memref<4x32xf32, #tpu.memory_space<vmem>>, vector<4x32xf32>
    %cst_7 = arith.constant dense<0.000000e+00> : vector<128x32xf32>
    %5 = tpu.matmul %3, %4, %cst_7 {dimension_numbers = #tpu.dot_dimension_numbers<[1], [0], [0], [1], [0, 0, 1, 1], [], []>} : vector<128x4xf32>, vector<4x32xf32>, vector<128x32xf32> -> vector<128x32xf32>
    %6 = arith.addf %2, %5 : vector<128x32xf32>
    %c0_8 = arith.constant 0 : index
    %c0_9 = arith.constant 0 : index
    %7 = vector.load %arg5[%c0_8, %c0_9] : memref<1x32xf32, #tpu.memory_space<vmem>>, vector<1x32xf32>
    %8 = vector.broadcast %7 : vector<1x32xf32> to vector<128x32xf32>
    %9 = arith.addf %6, %8 : vector<128x32xf32>
    %cst_10 = arith.constant 0.000000e+00 : f32
    %10 = vector.broadcast %cst_10 : f32 to vector<128x32xf32>
    %11 = arith.maximumf %9, %10 : vector<128x32xf32>
    %c0_11 = arith.constant 0 : index
    %c0_12 = arith.constant 0 : index
    %12 = vector.load %arg6[%c0_11, %c0_12] : memref<32x32xf32, #tpu.memory_space<vmem>>, vector<32x32xf32>
    %cst_13 = arith.constant dense<0.000000e+00> : vector<128x32xf32>
    %13 = tpu.matmul %11, %12, %cst_13 {dimension_numbers = #tpu.dot_dimension_numbers<[1], [0], [0], [1], [0, 0, 1, 1], [], []>} : vector<128x32xf32>, vector<32x32xf32>, vector<128x32xf32> -> vector<128x32xf32>
    %c0_14 = arith.constant 0 : index
    %c0_15 = arith.constant 0 : index
    %14 = vector.load %arg7[%c0_14, %c0_15] : memref<1x32xf32, #tpu.memory_space<vmem>>, vector<1x32xf32>
    %15 = vector.broadcast %14 : vector<1x32xf32> to vector<128x32xf32>
    %16 = arith.addf %13, %15 : vector<128x32xf32>
    %cst_16 = arith.constant 0.000000e+00 : f32
    %17 = vector.broadcast %cst_16 : f32 to vector<128x32xf32>
    %18 = arith.maximumf %16, %17 : vector<128x32xf32>
    %c0_17 = arith.constant 0 : index
    %c0_18 = arith.constant 0 : index
    %19 = vector.load %arg8[%c0_17, %c0_18] : memref<32x32xf32, #tpu.memory_space<vmem>>, vector<32x32xf32>
    %cst_19 = arith.constant dense<0.000000e+00> : vector<128x32xf32>
    %20 = tpu.matmul %18, %19, %cst_19 {dimension_numbers = #tpu.dot_dimension_numbers<[1], [0], [0], [1], [0, 0, 1, 1], [], []>} : vector<128x32xf32>, vector<32x32xf32>, vector<128x32xf32> -> vector<128x32xf32>
    %c0_20 = arith.constant 0 : index
    %c0_21 = arith.constant 0 : index
    %21 = vector.load %arg9[%c0_20, %c0_21] : memref<1x32xf32, #tpu.memory_space<vmem>>, vector<1x32xf32>
    %22 = vector.broadcast %21 : vector<1x32xf32> to vector<128x32xf32>
    %23 = arith.addf %20, %22 : vector<128x32xf32>
    %cst_22 = arith.constant 0.000000e+00 : f32
    %24 = vector.broadcast %cst_22 : f32 to vector<128x32xf32>
    %25 = arith.maximumf %23, %24 : vector<128x32xf32>
    %c0_23 = arith.constant 0 : index
    %c0_24 = arith.constant 0 : index
    %26 = vector.load %arg10[%c0_23, %c0_24] : memref<1x32xf32, #tpu.memory_space<vmem>>, vector<1x32xf32>
    %27 = vector.broadcast %26 : vector<1x32xf32> to vector<128x32xf32>
    %28 = arith.mulf %25, %27 : vector<128x32xf32>
    %cst_25 = arith.constant dense<0.000000e+00> : vector<128xf32>
    %29 = vector.multi_reduction <add>, %28, %cst_25 [1] : vector<128x32xf32> to vector<128xf32>
    %c0_26 = arith.constant 0 : index
    %30 = memref.load %arg11[%c0_26] : memref<1xf32, #tpu.memory_space<smem>>
    %31 = vector.broadcast %30 : f32 to vector<128xf32>
    %32 = arith.addf %29, %31 : vector<128xf32>
    %c0_27 = arith.constant 0 : index
    %c0_28 = arith.constant 0 : index
    %33 = vector.load %arg12[%c0_27, %c0_28] : memref<1x128xf32, #tpu.memory_space<vmem>>, vector<1x128xf32>
    %34 = vector.shape_cast %33 : vector<1x128xf32> to vector<128xf32>
    %35 = vector.shape_cast %32 : vector<128xf32> to vector<1x128xf32>
    tpu.vector_store %arg12[%c0_27, %c0_28], %35 {strides = array<i32>} : memref<1x128xf32, #tpu.memory_space<vmem>>, vector<1x128xf32>,
    return
  }
  func.func @transform_0(%arg0: i32) -> (i32, i32) {
    %c0_i32 = arith.constant 0 : i32
    %c0_i32_0 = arith.constant 0 : i32
    return %arg0, %c0_i32 : i32, i32
  }
  func.func @transform_1(%arg0: i32) -> (i32, i32) {
    %c0_i32 = arith.constant 0 : i32
    %c0_i32_0 = arith.constant 0 : i32
    return %arg0, %c0_i32 : i32, i32
  }
  func.func @transform_2(%arg0: i32) -> (i32, i32) {
    %c0_i32 = arith.constant 0 : i32
    %c0_i32_0 = arith.constant 0 : i32
    %c0_i32_1 = arith.constant 0 : i32
    return %c0_i32, %c0_i32_0 : i32, i32
  }
  func.func @transform_3(%arg0: i32) -> (i32, i32) {
    %c0_i32 = arith.constant 0 : i32
    %c0_i32_0 = arith.constant 0 : i32
    %c0_i32_1 = arith.constant 0 : i32
    return %c0_i32, %c0_i32_0 : i32, i32
  }
  func.func @transform_4(%arg0: i32) -> (i32, i32) {
    %c0_i32 = arith.constant 0 : i32
    %c0_i32_0 = arith.constant 0 : i32
    %c0_i32_1 = arith.constant 0 : i32
    return %c0_i32, %c0_i32_0 : i32, i32
  }
  func.func @transform_5(%arg0: i32) -> (i32, i32) {
    %c0_i32 = arith.constant 0 : i32
    %c0_i32_0 = arith.constant 0 : i32
    %c0_i32_1 = arith.constant 0 : i32
    return %c0_i32, %c0_i32_0 : i32, i32
  }
  func.func @transform_6(%arg0: i32) -> (i32, i32) {
    %c0_i32 = arith.constant 0 : i32
    %c0_i32_0 = arith.constant 0 : i32
    %c0_i32_1 = arith.constant 0 : i32
    return %c0_i32, %c0_i32_0 : i32, i32
  }
  func.func @transform_7(%arg0: i32) -> (i32, i32) {
    %c0_i32 = arith.constant 0 : i32
    %c0_i32_0 = arith.constant 0 : i32
    %c0_i32_1 = arith.constant 0 : i32
    return %c0_i32, %c0_i32_0 : i32, i32
  }
  func.func @transform_8(%arg0: i32) -> (i32, i32) {
    %c0_i32 = arith.constant 0 : i32
    %c0_i32_0 = arith.constant 0 : i32
    %c0_i32_1 = arith.constant 0 : i32
    return %c0_i32, %c0_i32_0 : i32, i32
  }
  func.func @transform_9(%arg0: i32) -> (i32, i32) {
    %c0_i32 = arith.constant 0 : i32
    %c0_i32_0 = arith.constant 0 : i32
    %c0_i32_1 = arith.constant 0 : i32
    return %c0_i32, %c0_i32_0 : i32, i32
  }
  func.func @transform_10(%arg0: i32) -> i32 {
    %c0_i32 = arith.constant 0 : i32
    %c0_i32_0 = arith.constant 0 : i32
    return %c0_i32 : i32
  }
  func.func @transform_11(%arg0: i32) -> (i32, i32) {
    %c0_i32 = arith.constant 0 : i32
    %c0_i32_0 = arith.constant 0 : i32
    return %c0_i32, %arg0 : i32, i32
  }
}

</mosaic_0001>

<bundles_post_ra>
// kernel: value_forward.1
= control target key start
LH: loop header
LB: loop body
LE: loop exit
PB: predicated region body
PF: predicated region fallthrough
CT: control target
= control target key end

     0   :  { %s2420_s0 = inlined_call_operand.vmem [shape: f32[256,12], index: 0, kind: input, shape index: {}]   ;;  %s2421_s1 = inlined_call_operand.vmem [shape: f32[256,4], index: 1, kind: input, shape index: {}]   ;;  %s2422_s2 = inlined_call_operand.vmem [shape: f32[12,32], index: 2, kind: input, shape index: {}]   ;;  %s2423_s3 = inlined_call_operand.vmem [shape: f32[4,32], index: 3, kind: input, shape index: {}]   ;;  %s2424_s4 = inlined_call_operand.vmem [shape: f32[1,32], index: 4, kind: input, shape index: {}]   ;;  %s2425_s5 = inlined_call_operand.vmem [shape: f32[32,32], index: 5, kind: input, shape index: {}]   ;;  %s2426_s6 = inlined_call_operand.vmem [shape: f32[1,32], index: 6, kind: input, shape index: {}]   ;;  %s2427_s7 = inlined_call_operand.vmem [shape: f32[32,32], index: 7, kind: input, shape index: {}]   ;;  %s2428_s8 = inlined_call_operand.vmem [shape: f32[1,32], index: 8, kind: input, shape index: {}]   ;;  %s2429_s9 = inlined_call_operand.vmem [shape: f32[1,32], index: 9, kind: input, shape index: {}]   ;;  %s2430_s10 = inlined_call_operand.<no memory space> [shape: f32[1], index: 10, kind: input, shape index: {}]   ;;  %s2431_s11 = inlined_call_operand.hbm [shape: f32[1,256], index: 11, kind: output, shape index: {}]  }
   0x1   :  { %16 = sst [smem:[#allocation2]] %s2430_s10 }
   0x2   :  { %17 = vsyncpa [#allocation4], 0 }
   0x3   :  { %19 = vsyncpa [#allocation4 + $0x1], 0  ;;  %s2056_s19 = smov 0   ;;  %s2058_s20 = smov 0  }
   0x4   :  { %s2060_s21 = smov 0   ;;  %s2062_s22 = smov 0  }
   0x5 LB: > { %s1616_s10 = sadd.s32 4294967295, %s1990_s22   ;;  %s1617_s23 = sadd.s32 4294967294, %s1990_s22   ;;  %s1990_s22 = sphi %s2062_s22, %s2437_s22   ;;  %s1986_s21 = sphi %s2060_s21, %s2436_s21   ;;  %s1982_s20 = sphi %s2058_s20, %s2435_s20   ;;  %s1978_s19 = sphi %s2056_s19, %s2434_s19  }
   0x6   : > { %s2079_s24 = sadd.s32 1, %s1990_s22   ;;  %s273_s25 = sadd.s32 1, %s1986_s21 }
   0x7   : > { %s270_s26 = ssub.s32 %s1990_s22, %s2079_s24  ;;  %p283_p0 = scmp.ne.s32.totalorder %s1986_s21, %s1982_s20 }
   0x8   : > { %p271_p1 = scmp.eq.s32.totalorder %s270_s26, 0  ;;  %p284_p2 = scmp.eq.s32.totalorder %s1616_s10, 1 }
   0x9   : > { %p289_p3 = scmp.ne.s32.totalorder %s1982_s20, %s1978_s19  ;;  %p290_p4 = scmp.eq.s32.totalorder %s1617_s23, 1 }
   0xa   : > { %s2089_s27 = scalar_select %p271_p1, %s1986_s21, %s273_s25  }
   0xb   : > { %p2091_p5 = por %p284_p2, %p283_p0  ;;  %p2095_p6 = por %p290_p4, %p289_p3 }
   0xc   : > { %p1620_p7 = scmp.ge.s32.totalorder %s1990_s22, 1  ;;  %p353_p8 = scmp.lt.s32.totalorder %s1990_s22, 3 }
   0xe   : > { %p354_p9 = pnand %p1620_p7, %p353_p8 }
   0xf   : > { %s2110_s17 = sshll.u32 (!%p354_p9), %s1616_s10, 4  ;;  %s395_s18 = sand.u32 (!%p354_p9), 1, %s1982_s20  }
  0x10   : > { %357 = sbr.rel (%p354_p9) target bundleno = 819 (0x333), region = 64  ;;  %p398_p10 = scmp.lt.s32.totalorder (!%p354_p9), %s2110_s17, 31 }
  0x11   : > { %s396_s23 = scalar_lea.vmem (!%p354_p9), [#allocation3], %s395_s18  ;;  %s2385_s12 = scalar_lea.hbm (!%p354_p9), %s2431_s11, %s2110_s17 }
  0x12   : > { %s1538_s13 = scalar_lea.sflag (!%p354_p9), [#allocation4], %s395_s18  ;;  %s1992_s16 = smov (!%p354_p9), [#allocation3]  }
  0x15   : > { %v426_v0 = vld [vmem:[%s2422_s2 + $0x8] sm:$0xf]  ;;  %vm493_vm0 = vcmask 1043456   ;;  %v443_v1 = vld [vmem:[%s2423_s3] sm:$0xf]  ;;  %v881_v3 = vld [vmem:[%s2425_s5 + $0x18] sm:$0xff] }
  0x16   : > { %v425_v2 = vld [vmem:[%s2422_s2] sm:$0xff]  ;;  %1799 = vmatprep.subr.msk.mxu1 %vm493_vm0, %v426_v0  ;;  %1773 = vmatprep.subr.msk.mxu0 %vm493_vm0, %v443_v1  ;;  %s399_s25 = scalar_select %p398_p10, %s2110_s17, 31  ;;  %vm444_vm1 = vcmask 31744   ;;  %vm642_vm2 = vcmask 97280   ;;  %v880_v10 = vld [vmem:[%s2425_s5 + $0x10] sm:$0xff]  ;;  %v879_v15 = vld [vmem:[%s2425_s5 + $0x8] sm:$0xff] }
  0x17   : > { %1800 = vmatpush3.msk.msra.mxu1 %vm493_vm0, %v426_v0  ;;  %1774 = vmatpush3.msk.msra.mxu0 %vm493_vm0, %v443_v1  ;;  %v878_v38 = vld [vmem:[%s2425_s5] sm:$0xff]  ;;  %v1102_v39 = vld [vmem:[%s2427_s7 + $0x18] sm:$0xff]  ;;  %v1101_v40 = vld [vmem:[%s2427_s7 + $0x10] sm:$0xff]  ;;  %vm889_vm3 = vcmask 261120   ;;  %vm1435_vm4 = vcmask 130112   ;;  %vm1442_vm5 = vcmask 195712  }
  0x18   : > { %1801 = vmatprep.subr.mxu1 %v425_v2  ;;  %1827 = vmatprep.subr.mxu0 %v881_v3  ;;  %s1622_s26 = sshll.u32 %s399_s25, 3  ;;  %v1100_v41 = vld [vmem:[%s2427_s7 + $0x8] sm:$0xff]  ;;  %v1099_v42 = vld [vmem:[%s2427_s7] sm:$0xff]  ;;  %vm1449_vm6 = vcmask 261312   ;;  %vm1456_vm7 = vcmask 326912   ;;  %vm1463_vm8 = vcmask 392512  }
  0x19   : > { %1802 = vmatpush3.msra.mxu1 %v425_v2  ;;  %s2120_s10 = scalar_lea.vmem %s2421_s1, %s1622_s26  ;;  %s2125_s15 = scalar_lea.vmem %s2420_s0, %s1622_s26  ;;  %v2215_v46 = vld [vmem:[%s2424_s4] ss:$0 sm:$0xff]  ;;  %vm1470_vm9 = vcmask 458112   ;;  %vm1477_vm10 = vcmask 523712   ;;  %vm1484_vm11 = vcmask 589312   ;;  %vm1491_vm12 = vcmask 654912  }
  0x1a   : > { %v427_v4 = vld [vmem:[%s2120_s10] sm:$0xff]  ;;  %v428_v6 = vld [vmem:[%s2120_s10 + $0x8] sm:$0xff]  ;;  %v429_v8 = vld [vmem:[%s2120_s10 + $0x10] sm:$0xff]  ;;  %1859 = vmatprep.subr.mxu1 %v1102_v39  ;;  %vm1498_vm13 = vcmask 720512   ;;  %vm1505_vm14 = vcmask 786112   ;;  %vm1512_vm15 = vcmask 851712  }
  0x1b   : > { %v409_v5 = vld [vmem:[%s2125_s15] sm:$0xff]  ;;  %1775 = vmatprep.mubr.msk.f32.mxu0 %vm444_vm1, %v427_v4  ;;  %v410_v7 = vld [vmem:[%s2125_s15 + $0x8] sm:$0xff]  ;;  %v411_v9 = vld [vmem:[%s2125_s15 + $0x10] sm:$0xff]  ;;  %vm1519_vm0 = vcmask 917312   ;;  %s1550_s25 = sshll.u32 %s396_s23, 4  ;;  %s1551_s25 = int_to_ptr.vmem [resolvable:$true] %s1550_s25 }
  0x1c   : > { %1803 = vmatprep.mubr.msk.f32.mxu1 %vm642_vm2, %v409_v5  ;;  %1776 = vmatmul.mubr.msk.f32.vlgmr.msra.gmra.mxu0 %vm444_vm1, %v428_v6  ;;  %v430_v11 = vld [vmem:[%s2120_s10 + $0x18] sm:$0xff]  ;;  %v431_v13 = vld [vmem:[%s2120_s10 + $0x20] sm:$0xff]  ;;  %v432_v16 = vld [vmem:[%s2120_s10 + $0x28] sm:$0xff]  ;;  %s1930_s14 = scalar_lea.vmem %s1551_s25, 16 }
  0x1d   : > { %1804 = vmatmul.mubr.msk.f32.vlgmr.msra.gmra.mxu1 %vm642_vm2, %v410_v7  ;;  %1778 = vmatprep.mubr.msk.f32.mxu0 %vm444_vm1, %v429_v8  ;;  %v412_v12 = vld [vmem:[%s2125_s15 + $0x18] sm:$0xff]  ;;  %v413_v14 = vld [vmem:[%s2125_s15 + $0x20] sm:$0xff]  ;;  %v414_v17 = vld [vmem:[%s2125_s15 + $0x28] sm:$0xff]  ;;  %p1931_p11 = scmp.ne.s32.totalorder %s1551_s25, %s1930_s14 }
  0x1e   : > { %1806 = vmatprep.mubr.msk.f32.mxu1 %vm642_vm2, %v411_v9  ;;  %1828 = vmatpush3.msra.mxu0 %v881_v3  ;;  %v433_v18 = vld [vmem:[%s2120_s10 + $0x30] sm:$0xff]  ;;  %v434_v20 = vld [vmem:[%s2120_s10 + $0x38] sm:$0xff]  ;;  %v435_v22 = vld [vmem:[%s2120_s10 + $0x40] sm:$0xff] }
  0x1f   : > { %1829 = vmatprep.subr.mxu0 %v880_v10  ;;  %v415_v19 = vld [vmem:[%s2125_s15 + $0x30] sm:$0xff]  ;;  %v416_v21 = vld [vmem:[%s2125_s15 + $0x38] sm:$0xff]  ;;  %v417_v23 = vld [vmem:[%s2125_s15 + $0x40] sm:$0xff]  ;;  %1860 = vmatpush3.msra.mxu1 %v1102_v39  ;;  %p1932_p12 = pnand %p1931_p11, %p2091_p5 }
  0x20   : > { %1779 = vmatmul.mubr.msk.f32.gmra.mxu0 %vm444_vm1, %v430_v11  ;;  %v436_v24 = vld [vmem:[%s2120_s10 + $0x48] sm:$0xff]  ;;  %v437_v26 = vld [vmem:[%s2120_s10 + $0x50] sm:$0xff]  ;;  %v438_v28 = vld [vmem:[%s2120_s10 + $0x58] sm:$0xff]  ;;  %1861 = vmatprep.subr.mxu1 %v1101_v40 }
  0x21   : > { %1807 = vmatmul.mubr.msk.f32.gmra.mxu1 %vm642_vm2, %v412_v12  ;;  %1781 = vmatprep.mubr.msk.f32.mxu0 %vm444_vm1, %v431_v13  ;;  %v418_v25 = vld [vmem:[%s2125_s15 + $0x48] sm:$0xff]  ;;  %v419_v27 = vld [vmem:[%s2125_s15 + $0x50] sm:$0xff]  ;;  %v420_v29 = vld [vmem:[%s2125_s15 + $0x58] sm:$0xff]  ;;  %p1933_p13 = pneg %p1932_p12 }
  0x22   : > { %1809 = vmatprep.mubr.msk.f32.mxu1 %vm642_vm2, %v413_v14  ;;  %1830 = vmatpush3.msra.mxu0 %v880_v10  ;;  %v439_v30 = vld [vmem:[%s2120_s10 + $0x60] sm:$0xff]  ;;  %v440_v32 = vld [vmem:[%s2120_s10 + $0x68] sm:$0xff]  ;;  %v441_v34 = vld [vmem:[%s2120_s10 + $0x70] sm:$0xff] }
  0x23   : > { %1831 = vmatprep.subr.mxu0 %v879_v15  ;;  %v421_v31 = vld [vmem:[%s2125_s15 + $0x60] sm:$0xff]  ;;  %v422_v33 = vld [vmem:[%s2125_s15 + $0x68] sm:$0xff]  ;;  %v423_v35 = vld [vmem:[%s2125_s15 + $0x70] sm:$0xff]  ;;  %1862 = vmatpush3.msra.mxu1 %v1101_v40 }
  0x24   : > { %1782 = vmatmul.mubr.msk.f32.gmra.mxu0 %vm444_vm1, %v432_v16  ;;  %v442_v36 = vld [vmem:[%s2120_s10 + $0x78] sm:$0xff]  ;;  %1863 = vmatprep.subr.mxu1 %v1100_v41  ;;  %s1934_s10 = sshll.u32 %s1992_s16, 4  ;;  %s1935_s10 = int_to_ptr.vmem [resolvable:$false] %s1934_s10 }
  0x25   : > { %1810 = vmatmul.mubr.msk.f32.gmra.mxu1 %vm642_vm2, %v414_v17  ;;  %1784 = vmatprep.mubr.msk.f32.mxu0 %vm444_vm1, %v433_v18  ;;  %v424_v37 = vld [vmem:[%s2125_s15 + $0x78] sm:$0xff]  ;;  %s1390_s15 = sld [smem:[#allocation2]]  ;;  %p1937_p0 = scmp.lt.s32.totalorder %s1551_s25, %s1935_s10 }
  0x26   : > { %1812 = vmatprep.mubr.msk.f32.mxu1 %vm642_vm2, %v415_v19  ;;  %1832 = vmatpush3.msra.mxu0 %v879_v15 }
  0x27   : > { %1833 = vmatprep.subr.mxu0 %v878_v38  ;;  %1864 = vmatpush3.msra.mxu1 %v1100_v41 }
  0x28   : > { %1785 = vmatmul.mubr.msk.f32.gmra.mxu0 %vm444_vm1, %v434_v20  ;;  %1865 = vmatprep.subr.mxu1 %v1099_v42 }
  0x29   : > { %1813 = vmatmul.mubr.msk.f32.gmra.mxu1 %vm642_vm2, %v416_v21  ;;  %1787 = vmatprep.mubr.msk.f32.mxu0 %vm444_vm1, %v435_v22 }
  0x2a   : > { %1815 = vmatprep.mubr.msk.f32.mxu1 %vm642_vm2, %v417_v23  ;;  %1834 = vmatpush3.msra.mxu0 %v878_v38 }
  0x2b   : > { %1866 = vmatpush3.msra.mxu1 %v1099_v42 }
  0x2c   : > { %1788 = vmatmul.mubr.msk.f32.gmra.mxu0 %vm444_vm1, %v436_v24 }
  0x2d   : > { %1816 = vmatmul.mubr.msk.f32.gmra.mxu1 %vm642_vm2, %v418_v25  ;;  %1790 = vmatprep.mubr.msk.f32.mxu0 %vm444_vm1, %v437_v26 }
  0x2e   : > { %1818 = vmatprep.mubr.msk.f32.mxu1 %vm642_vm2, %v419_v27 }
  0x30   : > { %1791 = vmatmul.mubr.msk.f32.gmra.mxu0 %vm444_vm1, %v438_v28 }
  0x31   : > { %1819 = vmatmul.mubr.msk.f32.gmra.mxu1 %vm642_vm2, %v420_v29  ;;  %1793 = vmatprep.mubr.msk.f32.mxu0 %vm444_vm1, %v439_v30 }
  0x32   : > { %1821 = vmatprep.mubr.msk.f32.mxu1 %vm642_vm2, %v421_v31 }
  0x34   : > { %1794 = vmatmul.mubr.msk.f32.gmra.mxu0 %vm444_vm1, %v440_v32 }
  0x35   : > { %1822 = vmatmul.mubr.msk.f32.gmra.mxu1 %vm642_vm2, %v422_v33  ;;  %1796 = vmatprep.mubr.msk.f32.mxu0 %vm444_vm1, %v441_v34 }
  0x36   : > { %1824 = vmatprep.mubr.msk.f32.mxu1 %vm642_vm2, %v423_v35 }
  0x38   : > { %1797 = vmatmul.mubr.msk.f32.gmra.mxu0 %vm444_vm1, %v442_v36  ;;  %vm1526_vm1 = vcmask 982912  }
  0x39   : > { %1825 = vmatmul.mubr.msk.f32.gmra.mxu1 %vm642_vm2, %v424_v37  ;;  %vm1533_vm2 = vcmask 1048512  }
  0xdc   : > { %v1777_v43 = vpop.f32.mrf.mxu0 }
  0xdd   : > { %v1805_v44 = vpop.f32.mrf.mxu1 }
  0xde   : > { %v766_v45 = vadd.f32 %v1805_v44, %v1777_v43  ;;  %v563_v47 = vpop.f32.mrf.mxu0 }
  0xdf   : > { %v760_v48 = vpop.f32.mrf.mxu1 }
  0xe0   : > { %v761_v49 = vadd.f32 %v760_v48, %v563_v47  ;;  %v847_v50 = vadd.f32 %v2215_v46, %v766_v45  ;;  %v1780_v51 = vpop.f32.mrf.mxu0 }
  0xe1   : > { %v1808_v52 = vpop.f32.mrf.mxu1 }
  0xe2   : > { %v846_v53 = vadd.f32 %v2215_v46, %v761_v49  ;;  %v776_v54 = vadd.f32 %v1808_v52, %v1780_v51  ;;  %v573_v55 = vpop.f32.mrf.mxu0  ;;  %v863_v59 = vmax.f32 %v847_v50, 0.0 }
  0xe3   : > { %v770_v56 = vpop.f32.mrf.mxu1 }
  0xe4   : > { %v862_v57 = vmax.f32 %v846_v53, 0.0  ;;  %v771_v58 = vadd.f32 %v770_v56, %v573_v55  ;;  %v849_v60 = vadd.f32 %v2215_v46, %v776_v54  ;;  %v1783_v61 = vpop.f32.mrf.mxu0 }
  0xe5   : > { %v1811_v62 = vpop.f32.mrf.mxu1 }
  0xe6   : > { %v848_v63 = vadd.f32 %v2215_v46, %v771_v58  ;;  %v786_v0 = vadd.f32 %v1811_v62, %v1783_v61  ;;  %1835 = vmatprep.mubr.msk.f32.mxu0 %vm889_vm3, %v862_v57  ;;  %v583_v1 = vpop.f32.mrf.mxu0  ;;  %v865_v5 = vmax.f32 %v849_v60, 0.0  ;;  %v1660_v61 = vld [vmem:[%s2426_s6] ss:$0 sm:$0xff] }
  0xe7   : > { %v780_v2 = vpop.f32.mrf.mxu1  ;;  %1836 = vmatmul.mubr.msk.f32.vlgmr.msra.gmra.mxu0 %vm889_vm3, %v863_v59 }
  0xe8   : > { %v864_v3 = vmax.f32 %v848_v63, 0.0  ;;  %v781_v4 = vadd.f32 %v780_v2, %v583_v1  ;;  %v851_v6 = vadd.f32 %v2215_v46, %v786_v0  ;;  %v1786_v7 = vpop.f32.mrf.mxu0 }
  0xe9   : > { %v1814_v8 = vpop.f32.mrf.mxu1 }
  0xea   : > { %v850_v9 = vadd.f32 %v2215_v46, %v781_v4  ;;  %v796_v10 = vadd.f32 %v1814_v8, %v1786_v7  ;;  %1838 = vmatprep.mubr.msk.f32.mxu0 %vm889_vm3, %v864_v3  ;;  %v593_v11 = vpop.f32.mrf.mxu0  ;;  %v867_v15 = vmax.f32 %v851_v6, 0.0 }
  0xeb   : > { %v790_v12 = vpop.f32.mrf.mxu1  ;;  %1839 = vmatmul.mubr.msk.f32.gmra.mxu0 %vm889_vm3, %v865_v5 }
  0xec   : > { %v866_v13 = vmax.f32 %v850_v9, 0.0  ;;  %v791_v14 = vadd.f32 %v790_v12, %v593_v11  ;;  %v853_v16 = vadd.f32 %v2215_v46, %v796_v10  ;;  %v1789_v17 = vpop.f32.mrf.mxu0 }
  0xed   : > { %v1817_v18 = vpop.f32.mrf.mxu1 }
  0xee   : > { %v852_v19 = vadd.f32 %v2215_v46, %v791_v14  ;;  %v806_v20 = vadd.f32 %v1817_v18, %v1789_v17  ;;  %1841 = vmatprep.mubr.msk.f32.mxu0 %vm889_vm3, %v866_v13  ;;  %v603_v21 = vpop.f32.mrf.mxu0  ;;  %v869_v25 = vmax.f32 %v853_v16, 0.0 }
  0xef   : > { %v800_v22 = vpop.f32.mrf.mxu1  ;;  %1842 = vmatmul.mubr.msk.f32.gmra.mxu0 %vm889_vm3, %v867_v15 }
  0xf0   : > { %v868_v23 = vmax.f32 %v852_v19, 0.0  ;;  %v801_v24 = vadd.f32 %v800_v22, %v603_v21  ;;  %v855_v26 = vadd.f32 %v2215_v46, %v806_v20  ;;  %v1792_v27 = vpop.f32.mrf.mxu0 }
  0xf1   : > { %v1820_v28 = vpop.f32.mrf.mxu1 }
  0xf2   : > { %v854_v29 = vadd.f32 %v2215_v46, %v801_v24  ;;  %v816_v30 = vadd.f32 %v1820_v28, %v1792_v27  ;;  %1844 = vmatprep.mubr.msk.f32.mxu0 %vm889_vm3, %v868_v23  ;;  %v613_v31 = vpop.f32.mrf.mxu0  ;;  %v871_v35 = vmax.f32 %v855_v26, 0.0 }
  0xf3   : > { %v810_v32 = vpop.f32.mrf.mxu1  ;;  %1845 = vmatmul.mubr.msk.f32.gmra.mxu0 %vm889_vm3, %v869_v25 }
  0xf4   : > { %v870_v33 = vmax.f32 %v854_v29, 0.0  ;;  %v811_v34 = vadd.f32 %v810_v32, %v613_v31  ;;  %v857_v36 = vadd.f32 %v2215_v46, %v816_v30  ;;  %v1795_v37 = vpop.f32.mrf.mxu0 }
  0xf5   : > { %v1823_v38 = vpop.f32.mrf.mxu1 }
  0xf6   : > { %v856_v39 = vadd.f32 %v2215_v46, %v811_v34  ;;  %v826_v40 = vadd.f32 %v1823_v38, %v1795_v37  ;;  %1847 = vmatprep.mubr.msk.f32.mxu0 %vm889_vm3, %v870_v33  ;;  %v623_v41 = vpop.f32.mrf.mxu0  ;;  %v873_v45 = vmax.f32 %v857_v36, 0.0 }
  0xf7   : > { %v820_v42 = vpop.f32.mrf.mxu1  ;;  %1848 = vmatmul.mubr.msk.f32.gmra.mxu0 %vm889_vm3, %v871_v35 }
  0xf8   : > { %v872_v43 = vmax.f32 %v856_v39, 0.0  ;;  %v821_v44 = vadd.f32 %v820_v42, %v623_v41  ;;  %v859_v47 = vadd.f32 %v2215_v46, %v826_v40  ;;  %v1798_v48 = vpop.f32.mrf.mxu0 }
  0xf9   : > { %v1826_v49 = vpop.f32.mrf.mxu1 }
  0xfa   : > { %v858_v50 = vadd.f32 %v2215_v46, %v821_v44  ;;  %v836_v51 = vadd.f32 %v1826_v49, %v1798_v48  ;;  %1850 = vmatprep.mubr.msk.f32.mxu0 %vm889_vm3, %v872_v43  ;;  %v633_v52 = vpop.f32.mrf.mxu0  ;;  %v875_v56 = vmax.f32 %v859_v47, 0.0 }
  0xfb   : > { %v830_v53 = vpop.f32.mrf.mxu1  ;;  %1851 = vmatmul.mubr.msk.f32.gmra.mxu0 %vm889_vm3, %v873_v45  ;;  %v2271_v45 = vld [vmem:[%s2428_s8] ss:$0 sm:$0xff] }
  0xfc   : > { %v874_v54 = vmax.f32 %v858_v50, 0.0  ;;  %v831_v55 = vadd.f32 %v830_v53, %v633_v52  ;;  %v861_v57 = vadd.f32 %v2215_v46, %v836_v51  ;;  %v2277_v50 = vld [vmem:[%s2429_s9] ss:$0 sm:$0xff] }
  0xfe   : > { %v860_v58 = vadd.f32 %v2215_v46, %v831_v55  ;;  %1853 = vmatprep.mubr.msk.f32.mxu0 %vm889_vm3, %v874_v54  ;;  %v877_v60 = vmax.f32 %v861_v57, 0.0 }
  0xff   : > { %1854 = vmatmul.mubr.msk.f32.gmra.mxu0 %vm889_vm3, %v875_v56 }
 0x100   : > { %v876_v59 = vmax.f32 %v860_v58, 0.0 }
 0x102   : > { %1856 = vmatprep.mubr.msk.f32.mxu0 %vm889_vm3, %v876_v59 }
 0x103   : > { %1857 = vmatmul.mubr.msk.f32.gmra.mxu0 %vm889_vm3, %v877_v60 }
 0x1a7   : > { %v1837_v62 = vpop.f32.mrf.mxu0 }
 0x1a8   : > { %v1010_v63 = vadd.f32 %v1837_v62, %v1660_v61 }
 0x1a9   : > { %v1004_v0 = vpop.f32.mrf.mxu0 }
 0x1aa   : > { %v1005_v1 = vadd.f32 %v1660_v61, %v1004_v0  ;;  %v1084_v3 = vmax.f32 %v1010_v63, 0.0 }
 0x1ab   : > { %v1840_v2 = vpop.f32.mrf.mxu0 }
 0x1ac   : > { %v1083_v46 = vmax.f32 %v1005_v1, 0.0  ;;  %v1020_v4 = vadd.f32 %v1840_v2, %v1660_v61 }
 0x1ad   : > { %v1014_v5 = vpop.f32.mrf.mxu0 }
 0x1ae   : > { %v1015_v6 = vadd.f32 %v1660_v61, %v1014_v5  ;;  %1867 = vmatprep.mubr.msk.f32.mxu1 %vm889_vm3, %v1083_v46  ;;  %v1086_v9 = vmax.f32 %v1020_v4, 0.0 }
 0x1af   : > { %v1843_v7 = vpop.f32.mrf.mxu0  ;;  %1868 = vmatmul.mubr.msk.f32.vlgmr.msra.gmra.mxu1 %vm889_vm3, %v1084_v3 }
 0x1b0   : > { %v1085_v8 = vmax.f32 %v1015_v6, 0.0  ;;  %v1030_v10 = vadd.f32 %v1843_v7, %v1660_v61 }
 0x1b1   : > { %v1024_v11 = vpop.f32.mrf.mxu0 }
 0x1b2   : > { %v1025_v12 = vadd.f32 %v1660_v61, %v1024_v11  ;;  %1870 = vmatprep.mubr.msk.f32.mxu1 %vm889_vm3, %v1085_v8  ;;  %v1088_v15 = vmax.f32 %v1030_v10, 0.0 }
 0x1b3   : > { %v1846_v13 = vpop.f32.mrf.mxu0  ;;  %1871 = vmatmul.mubr.msk.f32.gmra.mxu1 %vm889_vm3, %v1086_v9 }
 0x1b4   : > { %v1087_v14 = vmax.f32 %v1025_v12, 0.0  ;;  %v1040_v16 = vadd.f32 %v1846_v13, %v1660_v61 }
 0x1b5   : > { %v1034_v17 = vpop.f32.mrf.mxu0 }
 0x1b6   : > { %v1035_v18 = vadd.f32 %v1660_v61, %v1034_v17  ;;  %1873 = vmatprep.mubr.msk.f32.mxu1 %vm889_vm3, %v1087_v14  ;;  %v1090_v21 = vmax.f32 %v1040_v16, 0.0 }
 0x1b7   : > { %v1849_v19 = vpop.f32.mrf.mxu0  ;;  %1874 = vmatmul.mubr.msk.f32.gmra.mxu1 %vm889_vm3, %v1088_v15 }
 0x1b8   : > { %v1089_v20 = vmax.f32 %v1035_v18, 0.0  ;;  %v1050_v22 = vadd.f32 %v1849_v19, %v1660_v61 }
 0x1b9   : > { %v1044_v23 = vpop.f32.mrf.mxu0 }
 0x1ba   : > { %v1045_v24 = vadd.f32 %v1660_v61, %v1044_v23  ;;  %1876 = vmatprep.mubr.msk.f32.mxu1 %vm889_vm3, %v1089_v20  ;;  %v1092_v27 = vmax.f32 %v1050_v22, 0.0 }
 0x1bb   : > { %v1852_v25 = vpop.f32.mrf.mxu0  ;;  %1877 = vmatmul.mubr.msk.f32.gmra.mxu1 %vm889_vm3, %v1090_v21 }
 0x1bc   : > { %v1091_v26 = vmax.f32 %v1045_v24, 0.0  ;;  %v1060_v28 = vadd.f32 %v1852_v25, %v1660_v61 }
 0x1bd   : > { %v1054_v29 = vpop.f32.mrf.mxu0 }
 0x1be   : > { %v1055_v30 = vadd.f32 %v1660_v61, %v1054_v29  ;;  %1879 = vmatprep.mubr.msk.f32.mxu1 %vm889_vm3, %v1091_v26  ;;  %v1094_v33 = vmax.f32 %v1060_v28, 0.0 }
 0x1bf   : > { %v1855_v31 = vpop.f32.mrf.mxu0  ;;  %1880 = vmatmul.mubr.msk.f32.gmra.mxu1 %vm889_vm3, %v1092_v27 }
 0x1c0   : > { %v1093_v32 = vmax.f32 %v1055_v30, 0.0  ;;  %v1070_v34 = vadd.f32 %v1855_v31, %v1660_v61 }
 0x1c1   : > { %v1064_v35 = vpop.f32.mrf.mxu0 }
 0x1c2   : > { %v1065_v36 = vadd.f32 %v1660_v61, %v1064_v35  ;;  %1882 = vmatprep.mubr.msk.f32.mxu1 %vm889_vm3, %v1093_v32  ;;  %v1096_v39 = vmax.f32 %v1070_v34, 0.0 }
 0x1c3   : > { %v1858_v37 = vpop.f32.mrf.mxu0  ;;  %1883 = vmatmul.mubr.msk.f32.gmra.mxu1 %vm889_vm3, %v1094_v33 }
 0x1c4   : > { %v1095_v38 = vmax.f32 %v1065_v36, 0.0  ;;  %v1080_v40 = vadd.f32 %v1858_v37, %v1660_v61 }
 0x1c5   : > { %v1074_v41 = vpop.f32.mrf.mxu0 }
 0x1c6   : > { %v1075_v42 = vadd.f32 %v1660_v61, %v1074_v41  ;;  %1885 = vmatprep.mubr.msk.f32.mxu1 %vm889_vm3, %v1095_v38  ;;  %v1098_v44 = vmax.f32 %v1080_v40, 0.0 }
 0x1c7   : > { %1886 = vmatmul.mubr.msk.f32.gmra.mxu1 %vm889_vm3, %v1096_v39 }
 0x1c8   : > { %v1097_v43 = vmax.f32 %v1075_v42, 0.0 }
 0x1ca   : > { %1888 = vmatprep.mubr.msk.f32.mxu1 %vm889_vm3, %v1097_v43 }
 0x1cb   : > { %1889 = vmatmul.mubr.msk.f32.gmra.mxu1 %vm889_vm3, %v1098_v44 }
 0x26f   : > { %v1869_v47 = vpop.f32.mrf.mxu1 }
 0x270   : > { %v1230_v48 = vadd.f32 %v1869_v47, %v2271_v45 }
 0x271   : > { %v1224_v49 = vpop.f32.mrf.mxu1 }
 0x272   : > { %v1304_v51 = vmax.f32 %v1230_v48, 0.0  ;;  %v1225_v52 = vadd.f32 %v2271_v45, %v1224_v49 }
 0x273   : > { %v1872_v53 = vpop.f32.mrf.mxu1 }
 0x274   : > { %v1303_v54 = vmax.f32 %v1225_v52, 0.0  ;;  %v1240_v55 = vadd.f32 %v1872_v53, %v2271_v45  ;;  %v1327_v56 = vmul.f32 %v2277_v50, %v1304_v51 }
 0x275   : > { %v1234_v57 = vpop.f32.mrf.mxu1 }
 0x276   : > { %v1306_v58 = vmax.f32 %v1240_v55, 0.0  ;;  %v1235_v59 = vadd.f32 %v2271_v45, %v1234_v57  ;;  %v1345_v60 = vsel %vm889_vm3, %v1327_v56, 0.0  ;;  %v1326_v61 = vmul.f32 %v2277_v50, %v1303_v54 }
 0x277   : > { %1346 = vadd.xlane.f32.xlu0 %v1345_v60  ;;  %v1875_v62 = vpop.f32.mrf.mxu1 }
 0x278   : > { %v1305_v63 = vmax.f32 %v1235_v59, 0.0  ;;  %v1250_v0 = vadd.f32 %v1875_v62, %v2271_v45  ;;  %v1329_v1 = vmul.f32 %v2277_v50, %v1306_v58  ;;  %v1342_v46 = vsel %vm889_vm3, %v1326_v61, 0.0 }
 0x279   : > { %v1244_v2 = vpop.f32.mrf.mxu1 }
 0x27a   : > { %v1308_v3 = vmax.f32 %v1250_v0, 0.0  ;;  %v1245_v4 = vadd.f32 %v2271_v45, %v1244_v2  ;;  %v1351_v5 = vsel %vm889_vm3, %v1329_v1, 0.0  ;;  %v1328_v6 = vmul.f32 %v2277_v50, %v1305_v63 }
 0x27b   : > { %1352 = vadd.xlane.f32.xlu1 %v1351_v5  ;;  %v1878_v7 = vpop.f32.mrf.mxu1  ;;  %1343 = vadd.xlane.f32.xlu0 %v1342_v46  ;;  %v1424_v1 = vlaneseq  ;;  %v2331_v5 = vstv %s1390_s15  ;;  %s1936_s15 = scalar_lea.vmem %s1935_s10, 32 }
 0x27c   : > { %v1307_v8 = vmax.f32 %v1245_v4, 0.0  ;;  %v1260_v9 = vadd.f32 %v1878_v7, %v2271_v45  ;;  %v1348_v11 = vsel %vm889_vm3, %v1328_v6, 0.0  ;;  %v1331_v15 = vmul.f32 %v2277_v50, %v1308_v3  ;;  %p1938_p1 = scmp.lt.s32.totalorder %s1936_s15, %s1930_s14 }
 0x27d   : > { %v1254_v10 = vpop.f32.mrf.mxu1  ;;  %v2326_v2 = vand.u32 127, %v1424_v1  ;;  %v2328_v3 = vshrl.u32 %v1424_v1, 7 }
 0x27e   : > { %v1310_v12 = vmax.f32 %v1260_v9, 0.0  ;;  %v1255_v13 = vadd.f32 %v2271_v45, %v1254_v10  ;;  %v1330_v14 = vmul.f32 %v2277_v50, %v1307_v8  ;;  %v1357_v24 = vsel %vm889_vm3, %v1331_v15, 0.0  ;;  %p1939_p2 = por %p1938_p1, %p1937_p0 }
 0x27f   : > { %v1881_v16 = vpop.f32.mrf.mxu1  ;;  %1349 = vadd.xlane.f32.xlu1 %v1348_v11  ;;  %v1430_v4 = vadd.s32 4294967288, %v2326_v2  ;;  %v1444_v6 = vadd.s32 4294967272, %v2326_v2  ;;  %v1428_v8 = vsub.s32 %v2326_v2, %v2328_v3  ;;  %v1451_v11 = vadd.s32 4294967264, %v2326_v2 }
 0x280   : > { %v1309_v17 = vmax.f32 %v1255_v13, 0.0  ;;  %v1270_v18 = vadd.f32 %v1881_v16, %v2271_v45  ;;  %v1354_v19 = vsel %vm889_vm3, %v1330_v14, 0.0  ;;  %v1333_v21 = vmul.f32 %v2277_v50, %v1310_v12  ;;  %p1940_p3 = pnand %p1939_p2, %p1933_p13 }
 0x281   : > { %v1264_v20 = vpop.f32.mrf.mxu1  ;;  %1355 = vadd.xlane.f32.xlu0 %v1354_v19  ;;  %v1433_v12 = vsub.s32 %v1430_v4, %v2328_v3  ;;  %v1458_v15 = vadd.s32 4294967256, %v2326_v2  ;;  %v1447_v16 = vsub.s32 %v1444_v6, %v2328_v3  ;;  %v1514_v1 = vadd.s32 4294967192, %v2326_v2 }
 0x282   : > { %v1312_v22 = vmax.f32 %v1270_v18, 0.0  ;;  %v1265_v23 = vadd.f32 %v2271_v45, %v1264_v20  ;;  %v1332_v25 = vmul.f32 %v2277_v50, %v1309_v17  ;;  %v1363_v31 = vsel %vm889_vm3, %v1333_v21, 0.0 }
 0x283   : > { %v1884_v26 = vpop.f32.mrf.mxu1  ;;  %1358 = vadd.xlane.f32.xlu1 %v1357_v24  ;;  %v1454_v21 = vsub.s32 %v1451_v11, %v2328_v3 }
 0x284   : > { %v1311_v27 = vmax.f32 %v1265_v23, 0.0  ;;  %v1280_v28 = vadd.f32 %v1884_v26, %v2271_v45  ;;  %v1360_v29 = vsel %vm889_vm3, %v1332_v25, 0.0  ;;  %v1335_v35 = vmul.f32 %v2277_v50, %v1312_v22 }
 0x285   : > { %v1274_v30 = vpop.f32.mrf.mxu1  ;;  %1361 = vadd.xlane.f32.xlu0 %v1360_v29  ;;  %v1465_v22 = vadd.s32 4294967248, %v2326_v2 }
 0x286   : > { %v1314_v32 = vmax.f32 %v1280_v28, 0.0  ;;  %v1275_v33 = vadd.f32 %v2271_v45, %v1274_v30  ;;  %v1334_v34 = vmul.f32 %v2277_v50, %v1311_v27  ;;  %v1369_v44 = vsel %vm889_vm3, %v1335_v35, 0.0 }
 0x287   : > { %v1887_v36 = vpop.f32.mrf.mxu1  ;;  %1364 = vadd.xlane.f32.xlu1 %v1363_v31  ;;  %v1461_v27 = vsub.s32 %v1458_v15, %v2328_v3  ;;  %v1472_v28 = vadd.s32 4294967240, %v2326_v2 }
 0x288   : > { %v1313_v37 = vmax.f32 %v1275_v33, 0.0  ;;  %v1290_v38 = vadd.f32 %v1887_v36, %v2271_v45  ;;  %v1366_v39 = vsel %vm889_vm3, %v1334_v34, 0.0  ;;  %v1337_v41 = vmul.f32 %v2277_v50, %v1314_v32 }
 0x289   : > { %v1284_v40 = vpop.f32.mrf.mxu1  ;;  %1367 = vadd.xlane.f32.xlu0 %v1366_v39  ;;  %v1479_v32 = vadd.s32 4294967232, %v2326_v2  ;;  %v1468_v36 = vsub.s32 %v1465_v22, %v2328_v3  ;;  %v1486_v39 = vadd.s32 4294967224, %v2326_v2 }
 0x28a   : > { %v1316_v42 = vmax.f32 %v1290_v38, 0.0  ;;  %v1285_v43 = vadd.f32 %v2271_v45, %v1284_v40  ;;  %v1336_v47 = vmul.f32 %v2277_v50, %v1313_v37  ;;  %v1375_v54 = vsel %vm889_vm3, %v1337_v41, 0.0 }
 0x28b   : > { %v1890_v48 = vpop.f32.mrf.mxu1  ;;  %1370 = vadd.xlane.f32.xlu1 %v1369_v44 }
 0x28c   : > { %v1315_v49 = vmax.f32 %v1285_v43, 0.0  ;;  %v1300_v51 = vadd.f32 %v1890_v48, %v2271_v45  ;;  %v1372_v52 = vsel %vm889_vm3, %v1336_v47, 0.0  ;;  %v1339_v58 = vmul.f32 %v2277_v50, %v1316_v42 }
 0x28d   : > { %v1294_v53 = vpop.f32.mrf.mxu1  ;;  %1373 = vadd.xlane.f32.xlu0 %v1372_v52  ;;  %v1475_v43 = vsub.s32 %v1472_v28, %v2328_v3  ;;  %v1482_v47 = vsub.s32 %v1479_v32, %v2328_v3  ;;  %v1493_v52 = vadd.s32 4294967216, %v2326_v2 }
 0x28e   : > { %v1318_v55 = vmax.f32 %v1300_v51, 0.0  ;;  %v1295_v56 = vadd.f32 %v2271_v45, %v1294_v53  ;;  %v1338_v57 = vmul.f32 %v2277_v50, %v1315_v49  ;;  %v1381_v61 = vsel %vm889_vm3, %v1339_v58, 0.0 }
 0x28f   : > { %1376 = vadd.xlane.f32.xlu1 %v1375_v54  ;;  %v1489_v54 = vsub.s32 %v1486_v39, %v2328_v3  ;;  %v1500_v58 = vadd.s32 4294967208, %v2326_v2 }
 0x290   : > { %v1317_v59 = vmax.f32 %v1295_v56, 0.0  ;;  %v1378_v60 = vsel %vm889_vm3, %v1338_v57, 0.0  ;;  %v1341_v63 = vmul.f32 %v2277_v50, %v1318_v55 }
 0x291   : > { %1379 = vadd.xlane.f32.xlu0 %v1378_v60  ;;  %v1507_v60 = vadd.s32 4294967200, %v2326_v2  ;;  %v1503_v6 = vsub.s32 %v1500_v58, %v2328_v3 }
 0x292   : > { %v1340_v62 = vmul.f32 %v2277_v50, %v1317_v59  ;;  %v1387_v45 = vsel %vm889_vm3, %v1341_v63, 0.0  ;;  %v1437_v50 = vadd.s32 4294967280, %v2326_v2 }
 0x293   : > { %1382 = vadd.xlane.f32.xlu1 %v1381_v61 }
 0x294   : > { %v1384_v0 = vsel %vm889_vm3, %v1340_v62, 0.0  ;;  %v1440_v14 = vsub.s32 %v1437_v50, %v2328_v3 }
 0x295   : > { %1385 = vadd.xlane.f32.xlu0 %v1384_v0  ;;  %v1496_v0 = vsub.s32 %v1493_v52, %v2328_v3 }
 0x297   : > { %1388 = vadd.xlane.f32.xlu1 %v1387_v45 }
 0x300   : > { %v1347_v46 = vpop.xlane.xlu0 %1346 }
 0x301   : > { %v1393_v13 = vadd.f32 %v2331_v5, %v1347_v46 }
 0x303   : > { %v1434_v23 = vrot.slane %v1393_v13, %v1433_v12  ;;  %v1521_v12 = vadd.s32 4294967184, %v2326_v2 }
 0x304   : > { %v1353_v7 = vpop.xlane.xlu1 %1352  ;;  %v1344_v9 = vpop.xlane.xlu0 %1343 }
 0x305   : > { %v1392_v10 = vadd.f32 %v2331_v5, %v1344_v9  ;;  %v1395_v17 = vadd.f32 %v2331_v5, %v1353_v7 }
 0x307   : > { %v1429_v18 = vrot.slane %v1392_v10, %v1428_v8  ;;  %v1448_v29 = vrot.slane %v1395_v17, %v1447_v16  ;;  %v1510_v8 = vsub.s32 %v1507_v60, %v2328_v3 }
 0x308   : > { %v1350_v19 = vpop.xlane.xlu1 %1349 }
 0x309   : > { %v1394_v20 = vadd.f32 %v2331_v5, %v1350_v19  ;;  %v1436_v30 = vsel %vm1435_vm4, %v1434_v23, %v1429_v18  ;;  %v1528_v18 = vadd.s32 4294967176, %v2326_v2  ;;  %v1524_v23 = vsub.s32 %v1521_v12, %v2328_v3 }
 0x30a   : > { %v1356_v24 = vpop.xlane.xlu0 %1355 }
 0x30b   : > { %v1441_v25 = vrot.slane %v1394_v20, %v1440_v14  ;;  %v1396_v26 = vadd.f32 %v2331_v5, %v1356_v24  ;;  %v1517_v14 = vsub.s32 %v1514_v1, %v2328_v3  ;;  %v1531_v28 = vsub.s32 %v1528_v18, %v2328_v3 }
 0x30c   : > { %v1359_v31 = vpop.xlane.xlu1 %1358 }
 0x30d   : > { %v1443_v33 = vsel %vm1442_vm5, %v1441_v25, %v1436_v30  ;;  %v1455_v34 = vrot.slane %v1396_v26, %v1454_v21  ;;  %v1397_v35 = vadd.f32 %v2331_v5, %v1359_v31 }
 0x30e   : > { %v1450_v37 = vsel %vm1449_vm6, %v1448_v29, %v1443_v33  ;;  %v1362_v38 = vpop.xlane.xlu0 %1361 }
 0x30f   : > { %v1457_v40 = vsel %vm1456_vm7, %v1455_v34, %v1450_v37  ;;  %v1462_v41 = vrot.slane %v1397_v35, %v1461_v27  ;;  %v1398_v42 = vadd.f32 %v2331_v5, %v1362_v38 }
 0x310   : > { %v1365_v44 = vpop.xlane.xlu1 %1364 }
 0x311   : > { %v1464_v48 = vsel %vm1463_vm8, %v1462_v41, %v1457_v40  ;;  %v1469_v49 = vrot.slane %v1398_v42, %v1468_v36  ;;  %v1399_v51 = vadd.f32 %v2331_v5, %v1365_v44 }
 0x312   : > { %v1368_v53 = vpop.xlane.xlu0 %1367 }
 0x313   : > { %v1471_v55 = vsel %vm1470_vm9, %v1469_v49, %v1464_v48  ;;  %v1476_v56 = vrot.slane %v1399_v51, %v1475_v43  ;;  %v1400_v57 = vadd.f32 %v2331_v5, %v1368_v53 }
 0x314   : > { %v1371_v59 = vpop.xlane.xlu1 %1370 }
 0x315   : > { %v1478_v61 = vsel %vm1477_vm10, %v1476_v56, %v1471_v55  ;;  %v1483_v62 = vrot.slane %v1400_v57, %v1482_v47  ;;  %v1401_v63 = vadd.f32 %v2331_v5, %v1371_v59 }
 0x316   : > { %v1374_v45 = vpop.xlane.xlu0 %1373 }
 0x317   : > { %v1485_v46 = vsel %vm1484_vm11, %v1483_v62, %v1478_v61  ;;  %v1490_v4 = vrot.slane %v1401_v63, %v1489_v54  ;;  %v1402_v50 = vadd.f32 %v2331_v5, %v1374_v45 }
 0x318   : > { %v1377_v7 = vpop.xlane.xlu1 %1376 }
 0x319   : > { %v1492_v9 = vsel %vm1491_vm12, %v1490_v4, %v1485_v46  ;;  %v1497_v10 = vrot.slane %v1402_v50, %v1496_v0  ;;  %v1403_v11 = vadd.f32 %v2331_v5, %v1377_v7 }
 0x31a   : > { %v1380_v13 = vpop.xlane.xlu0 %1379 }
 0x31b   : > { %v1499_v15 = vsel %vm1498_vm13, %v1497_v10, %v1492_v9  ;;  %v1504_v16 = vrot.slane %v1403_v11, %v1503_v6  ;;  %v1404_v17 = vadd.f32 %v2331_v5, %v1380_v13 }
 0x31c   : > { %v1383_v19 = vpop.xlane.xlu1 %1382 }
 0x31d   : > { %v1506_v20 = vsel %vm1505_vm14, %v1504_v16, %v1499_v15  ;;  %v1511_v21 = vrot.slane %v1404_v17, %v1510_v8  ;;  %v1405_v22 = vadd.f32 %v2331_v5, %v1383_v19 }
 0x31e   : > { %v1386_v24 = vpop.xlane.xlu0 %1385 }
 0x31f   : > { %v1513_v25 = vsel %vm1512_vm15, %v1511_v21, %v1506_v20  ;;  %v1518_v26 = vrot.slane %v1405_v22, %v1517_v14  ;;  %v1406_v27 = vadd.f32 %v2331_v5, %v1386_v24 }
 0x320   : > { %v1389_v29 = vpop.xlane.xlu1 %1388 }
 0x321   : > { %v1520_v2 = vsel %vm1519_vm0, %v1518_v26, %v1513_v25  ;;  %v1525_v30 = vrot.slane %v1406_v27, %v1524_v23  ;;  %v1407_v31 = vadd.f32 %v2331_v5, %v1389_v29 }
 0x323   : > { %v1532_v32 = vrot.slane %v1407_v31, %v1531_v28  ;;  %v1527_v33 = vsel %vm1526_vm1, %v1525_v30, %v1520_v2 }
 0x325   : > { %v1534_v34 = vsel %vm1533_vm2, %v1532_v32, %v1527_v33 }
 0x326   : > { %1536 = vst [vmem:[%s396_s23] sm:$0x1] %v1534_v34 }
 0x327   : > { %1943 = shalt.err (!%p1940_p3)
}
 0x328   : > { %s1944_s17 = scalar_lea.hbm %s2385_s12, 16  ;;  %s1948_s26 = scalar_lea.hbm %s2431_s11, 32 }
 0x329   : > { %p1945_p4 = scmp.ne.s32.totalorder %s2385_s12, %s1944_s17  ;;  %p1949_p9 = scmp.lt.s32.totalorder %s2385_s12, %s2431_s11 }
 0x32a   : > { %p1950_p10 = scmp.lt.s32.totalorder %s1948_s26, %s1944_s17 }
 0x32b   : > { %p1946_p7 = pnand %p1945_p4, %p2091_p5 }
 0x32c   : > { %p1951_p11 = por %p1950_p10, %p1949_p9 }
 0x32d   : > { %p1947_p8 = pneg %p1946_p7 }
 0x32f   : > { %p1952_p12 = pnand %p1951_p11, %p1947_p8 }
 0x331   : > { %1955 = shalt.err (!%p1952_p12)
}
 0x332   : > { %1891 = dma.vmem_to_hbm [thread:$0]  (%p2091_p5), %s1551_s25, 16, %s2385_s12, %s1538_s13  }
 0x333 PF: > { %p1897_p13 = scmp.ge.s32.totalorder %s1990_s22, 2  ;;  %s1562_s14 = sand.u32 1, %s1978_s19  }
 0x334   : > { %s1563_s10 = scalar_lea.sflag [#allocation4], %s1562_s14 }
 0x335   : > { %p1894_p0 = pnand %p1897_p13, %p2095_p6 }
 0x337   : > { %p1895_p1 = pneg %p1894_p0 }
 0x339   : > { %1973 = dma.done.wait (%p1895_p1), %s1563_s10, 16  }
 0x33a   : > { %1975 = vsyncadd (%p1895_p1), %s1563_s10, 4294967280  ;;  %p22_p2 = scmp.ge.s32.totalorder %s2079_s24, 4   ;;  %s2434_s19 = smov %s1982_s20 }
 0x33b   : > { %s2435_s20 = smov %s1986_s21  ;;  %s2436_s21 = smov %s2089_s27 }
 0x33c   : > { %s2437_s22 = smov %s2079_s24  ;;  %24 = sbr.rel (!%p22_p2) target bundleno = 5 (0x5), region = 102 }
 0x341   :  { %1567 = vsyncpa [#allocation4], 1 }
 0x342   :  { %1569 = vsyncpa [#allocation4 + $0x1], 1 }

</bundles_post_ra>
